<compile_context>
chip_gen: v6e
topology: v6e:2x2x1
jax: 0.10.0
libtpu: 0.0.40
codegen_flags: <defaults>
</compile_context>

<pallas_src>
import functools

import jax
import jax.numpy as jnp
from jax.experimental import pallas as pl
from jax.experimental.pallas import tpu as pltpu

HIDDEN = 20        # hidden_sz from the module
IN_SZ = 1          # preproc=False -> LSTMCell(1, hidden_sz)
HIDDEN_PAD = 24    # hidden padded up to a multiple of 8 sublanes


# ----------------------------------------------------------------------------
# Kernel
# ----------------------------------------------------------------------------
def _lstm_optimizer_kernel(x_ref, st_ref,
                           wih1_ref, whh1_ref, b1_ref,
                           wih2_ref, whh2_ref, b2_ref,
                           wout_ref, bout_ref,
                           out_ref, st_out_ref):
    Hp = st_ref.shape[1]   # padded hidden size (24)

    def gates_to_state(gates, c):
        # PyTorch gate order [i, f, g, o]; each gate block is Hp rows, so the
        # slice offsets (0, Hp, 2Hp, 3Hp) are all multiples of 8 sublanes.
        i = jax.nn.sigmoid(gates[0 * Hp:1 * Hp, :])
        f = jax.nn.sigmoid(gates[1 * Hp:2 * Hp, :])
        g = jnp.tanh(gates[2 * Hp:3 * Hp, :])
        o = jax.nn.sigmoid(gates[3 * Hp:4 * Hp, :])
        c_new = f * c + i * g
        h_new = o * jnp.tanh(c_new)
        return h_new, c_new

    x = x_ref[...]          # (1, TN)
    h0 = st_ref[0]          # (Hp, TN)
    c0 = st_ref[1]
    h1 = st_ref[2]
    c1 = st_ref[3]

    # Layer 1 (input size 1): the K=1 input "matmul" is a VPU broadcast
    # multiply; only the hidden->gates contraction uses the MXU.
    gates1 = (wih1_ref[...] * x
              + jnp.dot(whh1_ref[...], h0, preferred_element_type=jnp.float32)
              + b1_ref[...])
    h0n, c0n = gates_to_state(gates1, c0)

    # Layer 2 (hidden -> hidden).
    gates2 = (jnp.dot(wih2_ref[...], h0n, preferred_element_type=jnp.float32)
              + jnp.dot(whh2_ref[...], h1, preferred_element_type=jnp.float32)
              + b2_ref[...])
    h1n, c1n = gates_to_state(gates2, c1)

    # Output projection Linear(hidden, 1): (1, Hp) @ (Hp, TN) -> (1, TN).
    out_ref[...] = (jnp.dot(wout_ref[...], h1n,
                            preferred_element_type=jnp.float32)
                    + bout_ref[0, 0])

    # Stacked in-place state update (aliased with the input state buffer).
    st_out_ref[0] = h0n
    st_out_ref[1] = c0n
    st_out_ref[2] = h1n
    st_out_ref[3] = c1n


# ----------------------------------------------------------------------------
# Weight preparation (PyTorch-shaped -> padded kernel-native layout)
# ----------------------------------------------------------------------------
def _pad_gate_rows(w, h=HIDDEN, hp=HIDDEN_PAD):
    """(4H, K) -> (4Hp, K): zero-pad each of the [i,f,g,o] blocks to Hp rows."""
    k = w.shape[1]
    wg = w.reshape(4, h, k)
    wg = jnp.pad(wg, ((0, 0), (0, hp - h), (0, 0)))
    return wg.reshape(4 * hp, k)


def _pad_hidden_cols(w, h=HIDDEN, hp=HIDDEN_PAD):
    """(R, H) -> (R, Hp): zero-pad the hidden (contraction) dimension."""
    return jnp.pad(w, ((0, 0), (0, hp - h)))


def _prepare_params(params):
    h = HIDDEN
    wih1 = _pad_gate_rows(params["w_ih1"].astype(jnp.float32))          # (4Hp, 1)
    whh1 = _pad_gate_rows(_pad_hidden_cols(params["w_hh1"]))            # (4Hp, Hp)
    b1 = _pad_gate_rows((params["b_ih1"] + params["b_hh1"]).reshape(4 * h, 1))
    wih2 = _pad_gate_rows(_pad_hidden_cols(params["w_ih2"]))            # (4Hp, Hp)
    whh2 = _pad_gate_rows(_pad_hidden_cols(params["w_hh2"]))            # (4Hp, Hp)
    b2 = _pad_gate_rows((params["b_ih2"] + params["b_hh2"]).reshape(4 * h, 1))
    wout = _pad_hidden_cols(params["w_out"])                            # (1, Hp)
    bout = params["b_out"].reshape(1, 1).astype(jnp.float32)            # SMEM scalar
    return wih1, whh1, b1, wih2, whh2, b2, wout, bout


# ----------------------------------------------------------------------------
# Wrapper
# ----------------------------------------------------------------------------
def _pick_block_n(n):
    """Lane-tile size: a multiple of 128, capped for small batches.

    VMEM per tile at tn=1024 is < 2 MiB (double-buffered streams + resident
    weights), comfortably inside the default scoped-VMEM budget.
    """
    t = 1024
    while t > 128 and t > n:
        t //= 2
    return t


def optimizer_forward(inp, states, params, *, block_n=None):
    """Forward pass matching Optimizer.forward (lstm, preproc=False).

    inp:    (N, 1) float32
    states: ((h0, c0), (h1, c1)), each (N, HIDDEN) float32
    params: dict from init_params (PyTorch-shaped weights)
    returns (out (N, 1), ((h0n, c0n), (h1n, c1n)))

    The kernel itself works on a batch-on-lanes (4, Hp, N) state layout; if
    the caller carries the stacked/padded state across optimizer steps the
    layout conversion below disappears entirely.
    """
    n = inp.shape[0]
    h, hp = HIDDEN, HIDDEN_PAD
    (h0, c0), (h1, c1) = states

    tn = block_n if block_n is not None else _pick_block_n(n)
    n_pad = pl.cdiv(n, tn) * tn
    grid = (n_pad // tn,)

    def to_lanes(a, rows):
        """(N, F) -> (rows, N_pad): feature on sublanes, batch on lanes."""
        a_t = a.astype(jnp.float32).T
        return jnp.pad(a_t, ((0, rows - a.shape[1]), (0, n_pad - n)))

    x_t = to_lanes(inp, 1)                                   # (1, Np)
    states_t = jnp.stack([to_lanes(h0, hp), to_lanes(c0, hp),
                          to_lanes(h1, hp), to_lanes(c1, hp)])  # (4, Hp, Np)

    wih1, whh1, b1, wih2, whh2, b2, wout, bout = _prepare_params(params)

    def resident_spec(shape):
        # Weights / biases: constant index_map -> fetched once, stay resident.
        return pl.BlockSpec(shape, lambda i: tuple(0 for _ in shape))

    x_spec = pl.BlockSpec((1, tn), lambda i: (0, i))
    state_spec = pl.BlockSpec((4, hp, tn), lambda i: (0, 0, i))

    in_specs = [
        x_spec,                                               # x
        state_spec,                                           # stacked h/c states
        resident_spec(wih1.shape), resident_spec(whh1.shape), resident_spec(b1.shape),
        resident_spec(wih2.shape), resident_spec(whh2.shape), resident_spec(b2.shape),
        resident_spec(wout.shape),
        pl.BlockSpec(memory_space=pltpu.MemorySpace.SMEM),    # bout scalar
    ]
    out_specs = (x_spec, state_spec)
    out_shape = (
        jax.ShapeDtypeStruct((1, n_pad), jnp.float32),        # Linear output
        jax.ShapeDtypeStruct((4, hp, n_pad), jnp.float32),    # new stacked states
    )

    out_t, states_new = pl.pallas_call(
        _lstm_optimizer_kernel,
        grid=grid,
        in_specs=in_specs,
        out_specs=out_specs,
        out_shape=out_shape,
        # In-place update of the stacked recurrent-state buffer.
        input_output_aliases={1: 1},
        compiler_params=pltpu.CompilerParams(
            dimension_semantics=("parallel",)),
    )(x_t, states_t, wih1, whh1, b1, wih2, whh2, b2, wout, bout)

    def from_lanes(idx):
        return states_new[idx, :h, :n].T

    out = out_t[:1, :n].T                                     # (N, 1)
    return out, ((from_lanes(0), from_lanes(1)),
                 (from_lanes(2), from_lanes(3)))


# ----------------------------------------------------------------------------
# Params init + pure-JAX reference
# ----------------------------------------------------------------------------
def init_params(key, hidden=HIDDEN, in_sz=IN_SZ):
    """Deterministic init mirroring PyTorch LSTMCell/Linear uniform init."""
    ks = jax.random.split(key, 10)
    k = 1.0 / jnp.sqrt(hidden)

    def u(key, shape, bound):
        return jax.random.uniform(key, shape, jnp.float32, -bound, bound)

    return {
        # LSTMCell(in_sz, hidden)
        "w_ih1": u(ks[0], (4 * hidden, in_sz), k),
        "w_hh1": u(ks[1], (4 * hidden, hidden), k),
        "b_ih1": u(ks[2], (4 * hidden,), k),
        "b_hh1": u(ks[3], (4 * hidden,), k),
        # LSTMCell(hidden, hidden)
        "w_ih2": u(ks[4], (4 * hidden, hidden), k),
        "w_hh2": u(ks[5], (4 * hidden, hidden), k),
        "b_ih2": u(ks[6], (4 * hidden,), k),
        "b_hh2": u(ks[7], (4 * hidden,), k),
        # Linear(hidden, 1)
        "w_out": u(ks[8], (1, hidden), k),
        "b_out": u(ks[9], (1,), k),
    }


def _reference_forward(inp, states, params):
    """Pure-JAX reference (same math) for a sanity check."""
    H = HIDDEN

    def cell(x, h, c, w_ih, w_hh, b_ih, b_hh):
        g = x @ w_ih.T + b_ih + h @ w_hh.T + b_hh
        i, f, gg, o = (jax.nn.sigmoid(g[:, :H]), jax.nn.sigmoid(g[:, H:2 * H]),
                       jnp.tanh(g[:, 2 * H:3 * H]), jax.nn.sigmoid(g[:, 3 * H:]))
        c_new = f * c + i * gg
        return o * jnp.tanh(c_new), c_new

    (h0, c0), (h1, c1) = states
    h0n, c0n = cell(inp, h0, c0, params["w_ih1"], params["w_hh1"],
                    params["b_ih1"], params["b_hh1"])
    h1n, c1n = cell(h0n, h1, c1, params["w_ih2"], params["w_hh2"],
                    params["b_ih2"], params["b_hh2"])
    out = h1n @ params["w_out"].T + params["b_out"]
    return out, ((h0n, c0n), (h1n, c1n))


# ----------------------------------------------------------------------------
# Demo / correctness check
# ----------------------------------------------------------------------------
if __name__ == "__main__":
    key = jax.random.PRNGKey(0)
    k_inp, k_h0, k_c0, k_h1, k_c1, k_params = jax.random.split(key, 6)

    # N = number of parameter coordinates handled per optimizer step.
    # Deliberately not a multiple of the tile to exercise padding + grid.
    N = 500
    inp = jax.random.normal(k_inp, (N, IN_SZ), jnp.float32)
    states = (
        (jax.random.normal(k_h0, (N, HIDDEN), jnp.float32),
         jax.random.normal(k_c0, (N, HIDDEN), jnp.float32)),
        (jax.random.normal(k_h1, (N, HIDDEN), jnp.float32),
         jax.random.normal(k_c1, (N, HIDDEN), jnp.float32)),
    )
    params = init_params(k_params)

    fwd = jax.jit(functools.partial(optimizer_forward, block_n=128))
    out, new_states = fwd(inp, states, params)
    out = jax.block_until_ready(out)
    new_states = jax.tree_util.tree_map(jax.block_until_ready, new_states)

    # Sanity check against the pure-JAX reference.
    ref_out, ref_states = _reference_forward(inp, states, params)
    assert jnp.allclose(out, ref_out, atol=1e-4), \
        float(jnp.max(jnp.abs(out - ref_out)))
    for (a, b), (ra, rb) in zip(new_states, ref_states):
        assert jnp.allclose(a, ra, atol=1e-4), float(jnp.max(jnp.abs(a - ra)))
        assert jnp.allclose(b, rb, atol=1e-4), float(jnp.max(jnp.abs(b - rb)))

    print("KERNEL_OK")
</pallas_src>

<mosaic_0001>
module attributes {stable_mosaic.version = 11 : i64} {
  func.func @_lstm_optimizer_kernel(%arg0: i32, %arg1: memref<1x128xf32, #tpu.memory_space<vmem>>, %arg2: memref<4x24x128xf32, #tpu.memory_space<vmem>>, %arg3: memref<96x1xf32, #tpu.memory_space<vmem>>, %arg4: memref<96x24xf32, #tpu.memory_space<vmem>>, %arg5: memref<96x1xf32, #tpu.memory_space<vmem>>, %arg6: memref<96x24xf32, #tpu.memory_space<vmem>>, %arg7: memref<96x24xf32, #tpu.memory_space<vmem>>, %arg8: memref<96x1xf32, #tpu.memory_space<vmem>>, %arg9: memref<1x24xf32, #tpu.memory_space<vmem>>, %arg10: memref<1x1xf32, #tpu.memory_space<smem>>, %arg11: memref<1x128xf32, #tpu.memory_space<vmem>>, %arg12: memref<4x24x128xf32, #tpu.memory_space<vmem>>) attributes {dimension_semantics = [#tpu.dimension_semantics<parallel>], iteration_bounds = array<i64: 4>, scalar_prefetch = 0 : i64, scratch_operands = 0 : i64, tpu.core_type = #tpu.core_type<tc>, window_params = [{transform_indices = @transform_0, window_bounds = array<i64: 1, 128>}, {transform_indices = @transform_1, window_bounds = array<i64: 4, 24, 128>}, {pipeline_mode = #tpu.pipeline_mode<synchronous>, transform_indices = @transform_2, window_bounds = array<i64: 96, 1>}, {pipeline_mode = #tpu.pipeline_mode<synchronous>, transform_indices = @transform_3, window_bounds = array<i64: 96, 24>}, {pipeline_mode = #tpu.pipeline_mode<synchronous>, transform_indices = @transform_4, window_bounds = array<i64: 96, 1>}, {pipeline_mode = #tpu.pipeline_mode<synchronous>, transform_indices = @transform_5, window_bounds = array<i64: 96, 24>}, {pipeline_mode = #tpu.pipeline_mode<synchronous>, transform_indices = @transform_6, window_bounds = array<i64: 96, 24>}, {pipeline_mode = #tpu.pipeline_mode<synchronous>, transform_indices = @transform_7, window_bounds = array<i64: 96, 1>}, {pipeline_mode = #tpu.pipeline_mode<synchronous>, transform_indices = @transform_8, window_bounds = array<i64: 1, 24>}, {transform_indices = @transform_9, window_bounds = array<i64: 1, 1>}, {transform_indices = @transform_10, window_bounds = array<i64: 1, 128>}, {transform_indices = @transform_11, window_bounds = array<i64: 4, 24, 128>}]} {
    %c0 = arith.constant 0 : index
    %c0_0 = arith.constant 0 : index
    %0 = vector.load %arg1[%c0, %c0_0] : memref<1x128xf32, #tpu.memory_space<vmem>>, vector<1x128xf32>
    %c0_1 = arith.constant 0 : index
    %c0_2 = arith.constant 0 : index
    %c0_3 = arith.constant 0 : index
    %1 = vector.load %arg2[%c0_1, %c0_2, %c0_3] : memref<4x24x128xf32, #tpu.memory_space<vmem>>, vector<1x24x128xf32>
    %2 = vector.shape_cast %1 : vector<1x24x128xf32> to vector<24x128xf32>
    %c1 = arith.constant 1 : index
    %c0_4 = arith.constant 0 : index
    %c0_5 = arith.constant 0 : index
    %3 = vector.load %arg2[%c1, %c0_4, %c0_5] : memref<4x24x128xf32, #tpu.memory_space<vmem>>, vector<1x24x128xf32>
    %4 = vector.shape_cast %3 : vector<1x24x128xf32> to vector<24x128xf32>
    %c2 = arith.constant 2 : index
    %c0_6 = arith.constant 0 : index
    %c0_7 = arith.constant 0 : index
    %5 = vector.load %arg2[%c2, %c0_6, %c0_7] : memref<4x24x128xf32, #tpu.memory_space<vmem>>, vector<1x24x128xf32>
    %6 = vector.shape_cast %5 : vector<1x24x128xf32> to vector<24x128xf32>
    %c3 = arith.constant 3 : index
    %c0_8 = arith.constant 0 : index
    %c0_9 = arith.constant 0 : index
    %7 = vector.load %arg2[%c3, %c0_8, %c0_9] : memref<4x24x128xf32, #tpu.memory_space<vmem>>, vector<1x24x128xf32>
    %8 = vector.shape_cast %7 : vector<1x24x128xf32> to vector<24x128xf32>
    %c0_10 = arith.constant 0 : index
    %c0_11 = arith.constant 0 : index
    %9 = vector.load %arg3[%c0_10, %c0_11] : memref<96x1xf32, #tpu.memory_space<vmem>>, vector<96x1xf32>
    %10 = vector.broadcast %9 : vector<96x1xf32> to vector<96x128xf32>
    %11 = vector.broadcast %0 : vector<1x128xf32> to vector<96x128xf32>
    %12 = arith.mulf %10, %11 : vector<96x128xf32>
    %c0_12 = arith.constant 0 : index
    %c0_13 = arith.constant 0 : index
    %13 = vector.load %arg4[%c0_12, %c0_13] : memref<96x24xf32, #tpu.memory_space<vmem>>, vector<96x24xf32>
    %cst = arith.constant dense<0.000000e+00> : vector<96x128xf32>
    %14 = tpu.matmul %13, %2, %cst {dimension_numbers = #tpu.dot_dimension_numbers<[1], [0], [0], [1], [0, 0, 1, 1], [], []>} : vector<96x24xf32>, vector<24x128xf32>, vector<96x128xf32> -> vector<96x128xf32>
    %15 = arith.addf %12, %14 : vector<96x128xf32>
    %c0_14 = arith.constant 0 : index
    %c0_15 = arith.constant 0 : index
    %16 = vector.load %arg5[%c0_14, %c0_15] : memref<96x1xf32, #tpu.memory_space<vmem>>, vector<96x1xf32>
    %17 = vector.broadcast %16 : vector<96x1xf32> to vector<96x128xf32>
    %18 = arith.addf %15, %17 : vector<96x128xf32>
    %19 = vector.extract_strided_slice %18 {offsets = [0, 0], sizes = [24, 128], strides = [1, 1]} : vector<96x128xf32> to vector<24x128xf32>
    %20 = arith.negf %19 : vector<24x128xf32>
    %21 = math.exp %20 : vector<24x128xf32>
    %cst_16 = arith.constant 1.000000e+00 : f32
    %22 = vector.broadcast %cst_16 : f32 to vector<24x128xf32>
    %23 = arith.addf %22, %21 : vector<24x128xf32>
    %24 = arith.divf %22, %23 : vector<24x128xf32>
    %25 = vector.extract_strided_slice %18 {offsets = [24, 0], sizes = [24, 128], strides = [1, 1]} : vector<96x128xf32> to vector<24x128xf32>
    %26 = arith.negf %25 : vector<24x128xf32>
    %27 = math.exp %26 : vector<24x128xf32>
    %cst_17 = arith.constant 1.000000e+00 : f32
    %28 = vector.broadcast %cst_17 : f32 to vector<24x128xf32>
    %29 = arith.addf %28, %27 : vector<24x128xf32>
    %30 = arith.divf %28, %29 : vector<24x128xf32>
    %31 = vector.extract_strided_slice %18 {offsets = [48, 0], sizes = [24, 128], strides = [1, 1]} : vector<96x128xf32> to vector<24x128xf32>
    %32 = math.tanh %31 : vector<24x128xf32>
    %33 = vector.extract_strided_slice %18 {offsets = [72, 0], sizes = [24, 128], strides = [1, 1]} : vector<96x128xf32> to vector<24x128xf32>
    %34 = arith.negf %33 : vector<24x128xf32>
    %35 = math.exp %34 : vector<24x128xf32>
    %cst_18 = arith.constant 1.000000e+00 : f32
    %36 = vector.broadcast %cst_18 : f32 to vector<24x128xf32>
    %37 = arith.addf %36, %35 : vector<24x128xf32>
    %38 = arith.divf %36, %37 : vector<24x128xf32>
    %39 = arith.mulf %30, %4 : vector<24x128xf32>
    %40 = arith.mulf %24, %32 : vector<24x128xf32>
    %41 = arith.addf %39, %40 : vector<24x128xf32>
    %42 = math.tanh %41 : vector<24x128xf32>
    %43 = arith.mulf %38, %42 : vector<24x128xf32>
    %c0_19 = arith.constant 0 : index
    %c0_20 = arith.constant 0 : index
    %44 = vector.load %arg6[%c0_19, %c0_20] : memref<96x24xf32, #tpu.memory_space<vmem>>, vector<96x24xf32>
    %cst_21 = arith.constant dense<0.000000e+00> : vector<96x128xf32>
    %45 = tpu.matmul %44, %43, %cst_21 {dimension_numbers = #tpu.dot_dimension_numbers<[1], [0], [0], [1], [0, 0, 1, 1], [], []>} : vector<96x24xf32>, vector<24x128xf32>, vector<96x128xf32> -> vector<96x128xf32>
    %c0_22 = arith.constant 0 : index
    %c0_23 = arith.constant 0 : index
    %46 = vector.load %arg7[%c0_22, %c0_23] : memref<96x24xf32, #tpu.memory_space<vmem>>, vector<96x24xf32>
    %cst_24 = arith.constant dense<0.000000e+00> : vector<96x128xf32>
    %47 = tpu.matmul %46, %6, %cst_24 {dimension_numbers = #tpu.dot_dimension_numbers<[1], [0], [0], [1], [0, 0, 1, 1], [], []>} : vector<96x24xf32>, vector<24x128xf32>, vector<96x128xf32> -> vector<96x128xf32>
    %48 = arith.addf %45, %47 : vector<96x128xf32>
    %c0_25 = arith.constant 0 : index
    %c0_26 = arith.constant 0 : index
    %49 = vector.load %arg8[%c0_25, %c0_26] : memref<96x1xf32, #tpu.memory_space<vmem>>, vector<96x1xf32>
    %50 = vector.broadcast %49 : vector<96x1xf32> to vector<96x128xf32>
    %51 = arith.addf %48, %50 : vector<96x128xf32>
    %52 = vector.extract_strided_slice %51 {offsets = [0, 0], sizes = [24, 128], strides = [1, 1]} : vector<96x128xf32> to vector<24x128xf32>
    %53 = arith.negf %52 : vector<24x128xf32>
    %54 = math.exp %53 : vector<24x128xf32>
    %cst_27 = arith.constant 1.000000e+00 : f32
    %55 = vector.broadcast %cst_27 : f32 to vector<24x128xf32>
    %56 = arith.addf %55, %54 : vector<24x128xf32>
    %57 = arith.divf %55, %56 : vector<24x128xf32>
    %58 = vector.extract_strided_slice %51 {offsets = [24, 0], sizes = [24, 128], strides = [1, 1]} : vector<96x128xf32> to vector<24x128xf32>
    %59 = arith.negf %58 : vector<24x128xf32>
    %60 = math.exp %59 : vector<24x128xf32>
    %cst_28 = arith.constant 1.000000e+00 : f32
    %61 = vector.broadcast %cst_28 : f32 to vector<24x128xf32>
    %62 = arith.addf %61, %60 : vector<24x128xf32>
    %63 = arith.divf %61, %62 : vector<24x128xf32>
    %64 = vector.extract_strided_slice %51 {offsets = [48, 0], sizes = [24, 128], strides = [1, 1]} : vector<96x128xf32> to vector<24x128xf32>
    %65 = math.tanh %64 : vector<24x128xf32>
    %66 = vector.extract_strided_slice %51 {offsets = [72, 0], sizes = [24, 128], strides = [1, 1]} : vector<96x128xf32> to vector<24x128xf32>
    %67 = arith.negf %66 : vector<24x128xf32>
    %68 = math.exp %67 : vector<24x128xf32>
    %cst_29 = arith.constant 1.000000e+00 : f32
    %69 = vector.broadcast %cst_29 : f32 to vector<24x128xf32>
    %70 = arith.addf %69, %68 : vector<24x128xf32>
    %71 = arith.divf %69, %70 : vector<24x128xf32>
    %72 = arith.mulf %63, %8 : vector<24x128xf32>
    %73 = arith.mulf %57, %65 : vector<24x128xf32>
    %74 = arith.addf %72, %73 : vector<24x128xf32>
    %75 = math.tanh %74 : vector<24x128xf32>
    %76 = arith.mulf %71, %75 : vector<24x128xf32>
    %c0_30 = arith.constant 0 : index
    %c0_31 = arith.constant 0 : index
    %77 = vector.load %arg9[%c0_30, %c0_31] : memref<1x24xf32, #tpu.memory_space<vmem>>, vector<1x24xf32>
    %cst_32 = arith.constant dense<0.000000e+00> : vector<1x128xf32>
    %78 = tpu.matmul %77, %76, %cst_32 {dimension_numbers = #tpu.dot_dimension_numbers<[1], [0], [0], [1], [0, 0, 1, 1], [], []>} : vector<1x24xf32>, vector<24x128xf32>, vector<1x128xf32> -> vector<1x128xf32>
    %c0_33 = arith.constant 0 : index
    %c0_34 = arith.constant 0 : index
    %79 = memref.load %arg10[%c0_33, %c0_34] : memref<1x1xf32, #tpu.memory_space<smem>>
    %80 = vector.broadcast %79 : f32 to vector<1x128xf32>
    %81 = arith.addf %78, %80 : vector<1x128xf32>
    %c0_35 = arith.constant 0 : index
    %c0_36 = arith.constant 0 : index
    %82 = vector.load %arg11[%c0_35, %c0_36] : memref<1x128xf32, #tpu.memory_space<vmem>>, vector<1x128xf32>
    tpu.vector_store %arg11[%c0_35, %c0_36], %81 {strides = array<i32>} : memref<1x128xf32, #tpu.memory_space<vmem>>, vector<1x128xf32>,
    %c0_37 = arith.constant 0 : index
    %c0_38 = arith.constant 0 : index
    %c0_39 = arith.constant 0 : index
    %83 = vector.load %arg12[%c0_37, %c0_38, %c0_39] : memref<4x24x128xf32, #tpu.memory_space<vmem>>, vector<1x24x128xf32>
    %84 = vector.shape_cast %83 : vector<1x24x128xf32> to vector<24x128xf32>
    %85 = vector.shape_cast %43 : vector<24x128xf32> to vector<1x24x128xf32>
    tpu.vector_store %arg12[%c0_37, %c0_38, %c0_39], %85 {strides = array<i32>} : memref<4x24x128xf32, #tpu.memory_space<vmem>>, vector<1x24x128xf32>,
    %c1_40 = arith.constant 1 : index
    %c0_41 = arith.constant 0 : index
    %c0_42 = arith.constant 0 : index
    %86 = vector.load %arg12[%c1_40, %c0_41, %c0_42] : memref<4x24x128xf32, #tpu.memory_space<vmem>>, vector<1x24x128xf32>
    %87 = vector.shape_cast %86 : vector<1x24x128xf32> to vector<24x128xf32>
    %88 = vector.shape_cast %41 : vector<24x128xf32> to vector<1x24x128xf32>
    tpu.vector_store %arg12[%c1_40, %c0_41, %c0_42], %88 {strides = array<i32>} : memref<4x24x128xf32, #tpu.memory_space<vmem>>, vector<1x24x128xf32>,
    %c2_43 = arith.constant 2 : index
    %c0_44 = arith.constant 0 : index
    %c0_45 = arith.constant 0 : index
    %89 = vector.load %arg12[%c2_43, %c0_44, %c0_45] : memref<4x24x128xf32, #tpu.memory_space<vmem>>, vector<1x24x128xf32>
    %90 = vector.shape_cast %89 : vector<1x24x128xf32> to vector<24x128xf32>
    %91 = vector.shape_cast %76 : vector<24x128xf32> to vector<1x24x128xf32>
    tpu.vector_store %arg12[%c2_43, %c0_44, %c0_45], %91 {strides = array<i32>} : memref<4x24x128xf32, #tpu.memory_space<vmem>>, vector<1x24x128xf32>,
    %c3_46 = arith.constant 3 : index
    %c0_47 = arith.constant 0 : index
    %c0_48 = arith.constant 0 : index
    %92 = vector.load %arg12[%c3_46, %c0_47, %c0_48] : memref<4x24x128xf32, #tpu.memory_space<vmem>>, vector<1x24x128xf32>
    %93 = vector.shape_cast %92 : vector<1x24x128xf32> to vector<24x128xf32>
    %94 = vector.shape_cast %74 : vector<24x128xf32> to vector<1x24x128xf32>
    tpu.vector_store %arg12[%c3_46, %c0_47, %c0_48], %94 {strides = array<i32>} : memref<4x24x128xf32, #tpu.memory_space<vmem>>, vector<1x24x128xf32>,
    return
  }
  func.func @transform_0(%arg0: i32) -> (i32, i32) {
    %c0_i32 = arith.constant 0 : i32
    %c0_i32_0 = arith.constant 0 : i32
    return %c0_i32, %arg0 : i32, i32
  }
  func.func @transform_1(%arg0: i32) -> (i32, i32, i32) {
    %c0_i32 = arith.constant 0 : i32
    %c0_i32_0 = arith.constant 0 : i32
    %c0_i32_1 = arith.constant 0 : i32
    return %c0_i32, %c0_i32_0, %arg0 : i32, i32, i32
  }
  func.func @transform_2(%arg0: i32) -> (i32, i32) {
    %c0_i32 = arith.constant 0 : i32
    %c0_i32_0 = arith.constant 0 : i32
    %c0_i32_1 = arith.constant 0 : i32
    return %c0_i32, %c0_i32_0 : i32, i32
  }
  func.func @transform_3(%arg0: i32) -> (i32, i32) {
    %c0_i32 = arith.constant 0 : i32
    %c0_i32_0 = arith.constant 0 : i32
    %c0_i32_1 = arith.constant 0 : i32
    return %c0_i32, %c0_i32_0 : i32, i32
  }
  func.func @transform_4(%arg0: i32) -> (i32, i32) {
    %c0_i32 = arith.constant 0 : i32
    %c0_i32_0 = arith.constant 0 : i32
    %c0_i32_1 = arith.constant 0 : i32
    return %c0_i32, %c0_i32_0 : i32, i32
  }
  func.func @transform_5(%arg0: i32) -> (i32, i32) {
    %c0_i32 = arith.constant 0 : i32
    %c0_i32_0 = arith.constant 0 : i32
    %c0_i32_1 = arith.constant 0 : i32
    return %c0_i32, %c0_i32_0 : i32, i32
  }
  func.func @transform_6(%arg0: i32) -> (i32, i32) {
    %c0_i32 = arith.constant 0 : i32
    %c0_i32_0 = arith.constant 0 : i32
    %c0_i32_1 = arith.constant 0 : i32
    return %c0_i32, %c0_i32_0 : i32, i32
  }
  func.func @transform_7(%arg0: i32) -> (i32, i32) {
    %c0_i32 = arith.constant 0 : i32
    %c0_i32_0 = arith.constant 0 : i32
    %c0_i32_1 = arith.constant 0 : i32
    return %c0_i32, %c0_i32_0 : i32, i32
  }
  func.func @transform_8(%arg0: i32) -> (i32, i32) {
    %c0_i32 = arith.constant 0 : i32
    %c0_i32_0 = arith.constant 0 : i32
    %c0_i32_1 = arith.constant 0 : i32
    return %c0_i32, %c0_i32_0 : i32, i32
  }
  func.func @transform_9(%arg0: i32) -> (i32, i32) {
    %c0_i32 = arith.constant 0 : i32
    %c0_i32_0 = arith.constant 0 : i32
    %c0_i32_1 = arith.constant 0 : i32
    return %c0_i32, %c0_i32_0 : i32, i32
  }
  func.func @transform_10(%arg0: i32) -> (i32, i32) {
    %c0_i32 = arith.constant 0 : i32
    %c0_i32_0 = arith.constant 0 : i32
    return %c0_i32, %arg0 : i32, i32
  }
  func.func @transform_11(%arg0: i32) -> (i32, i32, i32) {
    %c0_i32 = arith.constant 0 : i32
    %c0_i32_0 = arith.constant 0 : i32
    %c0_i32_1 = arith.constant 0 : i32
    return %c0_i32, %c0_i32_0, %arg0 : i32, i32, i32
  }
}

</mosaic_0001>

<bundles_post_ra>
// kernel: optimizer_forward.1
= control target key start
LH: loop header
LB: loop body
LE: loop exit
PB: predicated region body
PF: predicated region fallthrough
CT: control target
= control target key end

     0   :  { %s2531_s0 = inlined_call_operand.vmem [shape: f32[1,512], index: 0, kind: input, shape index: {}]   ;;  %s2532_s1 = inlined_call_operand.vmem [shape: f32[4,24,512], index: 1, kind: input, shape index: {}, may-alias: {1,11}]   ;;  %s2533_s2 = inlined_call_operand.vmem [shape: f32[96,1], index: 2, kind: input, shape index: {}]   ;;  %s2534_s3 = inlined_call_operand.vmem [shape: f32[96,24], index: 3, kind: input, shape index: {}]   ;;  %s2535_s4 = inlined_call_operand.vmem [shape: f32[96,1], index: 4, kind: input, shape index: {}]   ;;  %s2536_s5 = inlined_call_operand.vmem [shape: f32[96,24], index: 5, kind: input, shape index: {}]   ;;  %s2537_s6 = inlined_call_operand.vmem [shape: f32[96,24], index: 6, kind: input, shape index: {}]   ;;  %s2538_s7 = inlined_call_operand.vmem [shape: f32[96,1], index: 7, kind: input, shape index: {}]   ;;  %s2539_s8 = inlined_call_operand.vmem [shape: f32[1,24], index: 8, kind: input, shape index: {}]   ;;  %s2540_s9 = inlined_call_operand.<no memory space> [shape: f32[1,1], index: 9, kind: input, shape index: {}]   ;;  %s2541_s10 = inlined_call_operand.vmem [shape: f32[1,512], index: 10, kind: output, shape index: {0}]   ;;  %s2542_s11 = inlined_call_operand.vmem [shape: f32[4,24,512], index: 11, kind: output, shape index: {1}, may-alias: {1,11}]  }
   0x1   :  { %17 = sst [smem:[#allocation2]] %s2540_s9 }
   0x2   :  { %s2138_s19 = smov 0   ;;  %s2140_s20 = smov 0  }
   0x3   :  { %s2142_s21 = smov 0  }
   0x4 LB: > { %s2154_s9 = sadd.s32 4294967295, %s2070_s21   ;;  %s2157_s22 = sadd.s32 1, %s2070_s21   ;;  %s2070_s21 = sphi %s2142_s21, %s2546_s21   ;;  %s2066_s20 = sphi %s2140_s20, %s2545_s20   ;;  %s2062_s19 = sphi %s2138_s19, %s2544_s19  }
   0x5   : > { %s53_s23 = ssub.s32 %s2070_s21, %s2157_s22  ;;  %s56_s24 = sadd.s32 1, %s2066_s20 }
   0x6   : > { %p54_p0 = scmp.eq.s32.totalorder %s53_s23, 0  ;;  %p63_p1 = scmp.ne.s32.totalorder %s2066_s20, %s2062_s19 }
   0x7   : > { %p64_p2 = scmp.eq.s32.totalorder %s2070_s21, 0  ;;  %p287_p3 = scmp.eq.s32.totalorder %s2154_s9, 3 }
   0x8   : > { %s2167_s25 = scalar_select %p54_p0, %s2066_s20, %s56_s24  }
   0x9   : > { %p65_p4 = por %p64_p2, %p63_p1  ;;  %p2169_p5 = por %p287_p3, %p63_p1 }
   0xa   : > { %p1705_p6 = scmp.ge.s32.totalorder %s2070_s21, 4 }
   0xc   : > { %333 = sbr.rel (%p1705_p6) target bundleno = 33 (0x21), region = 48 }
  0x11   : > { %342 = sbr.rel (!%p65_p4) target bundleno = 33 (0x21), region = 56  ;;  %s344_s27 = sand.u32 (%p65_p4), 1, %s2066_s20  }
  0x12   : > { %s1706_s28 = sshll.u32 (%p65_p4), %s2070_s21, 3  ;;  %s1921_s29 = smul.u32 (%p65_p4), 96, %s344_s27 }
  0x13   : > { %s348_s13 = scalar_lea.vmem (%p65_p4), %s2532_s1, %s1706_s28 }
  0x14   : > { %v399_v0 = vld [vmem:[%s348_s13] sm:$0xff] (%p65_p4)  ;;  %s346_s14 = scalar_lea.vmem (%p65_p4), [#allocation3], %s1921_s29 }
  0x15   : > { %v401_v1 = vld [vmem:[%s348_s13 + $0x20] sm:$0xff] (%p65_p4)  ;;  %400 = vst [vmem:[%s346_s14] sm:$0xff] (%p65_p4), %v399_v0 }
  0x16   : > { %v403_v2 = vld [vmem:[%s348_s13 + $0x40] sm:$0xff]  ;;  %402 = vst [vmem:[%s346_s14 + $0x8] sm:$0xff] %v401_v1 }
  0x17   : > { %v405_v3 = vld [vmem:[%s348_s13 + $0x60] sm:$0xff]  ;;  %404 = vst [vmem:[%s346_s14 + $0x10] sm:$0xff] %v403_v2 }
  0x18   : > { %v407_v4 = vld [vmem:[%s348_s13 + $0x80] sm:$0xff]  ;;  %406 = vst [vmem:[%s346_s14 + $0x18] sm:$0xff] %v405_v3 }
  0x19   : > { %v409_v5 = vld [vmem:[%s348_s13 + $0xa0] sm:$0xff]  ;;  %408 = vst [vmem:[%s346_s14 + $0x20] sm:$0xff] %v407_v4 }
  0x1a   : > { %410 = vst [vmem:[%s346_s14 + $0x28] sm:$0xff] %v409_v5  ;;  %v411_v6 = vld [vmem:[%s348_s13 + $0xc0] sm:$0xff] }
  0x1b   : > { %v413_v7 = vld [vmem:[%s348_s13 + $0xe0] sm:$0xff]  ;;  %412 = vst [vmem:[%s346_s14 + $0x30] sm:$0xff] %v411_v6 }
  0x1c   : > { %v415_v8 = vld [vmem:[%s348_s13 + $0x100] sm:$0xff]  ;;  %414 = vst [vmem:[%s346_s14 + $0x38] sm:$0xff] %v413_v7 }
  0x1d   : > { %416 = vst [vmem:[%s346_s14 + $0x40] sm:$0xff] %v415_v8  ;;  %v417_v9 = vld [vmem:[%s348_s13 + $0x120] sm:$0xff] }
  0x1e   : > { %v419_v10 = vld [vmem:[%s348_s13 + $0x140] sm:$0xff]  ;;  %418 = vst [vmem:[%s346_s14 + $0x48] sm:$0xff] %v417_v9 }
  0x1f   : > { %v421_v11 = vld [vmem:[%s348_s13 + $0x160] sm:$0xff]  ;;  %420 = vst [vmem:[%s346_s14 + $0x50] sm:$0xff] %v419_v10 }
  0x20   : > { %422 = vst [vmem:[%s346_s14 + $0x58] sm:$0xff] %v421_v11 }
  0x21 PF: > { %p1707_p7 = scmp.ge.s32.totalorder %s2070_s21, 1  ;;  %p427_p8 = scmp.lt.s32.totalorder %s2070_s21, 5 }
  0x23   : > { %p428_p9 = pnand %p1707_p7, %p427_p8 }
  0x24   : > { %s434_s23 = sand.u32 (!%p428_p9), 1, %s2062_s19   ;;  %p478_p10 = scmp.lt.s32.totalorder (!%p428_p9), %s2154_s9, 3 }
  0x25   : > { %431 = sbr.rel (%p428_p9) target bundleno = 775 (0x307), region = 94 }
  0x26   : > { %s2188_s24 = smul.u32 (!%p428_p9), 96, %s434_s23 }
  0x28   : > { %s2205_s14 = scalar_lea.vmem (!%p428_p9), [#allocation3], %s2188_s24  ;;  %s2427_s12 = scalar_lea.vmem (!%p428_p9), [#allocation4], %s2188_s24 }
  0x2a   : > { %v502_v12 = vld [vmem:[%s2533_s2 + $0x10] sm:$0xff]  ;;  %v501_v13 = vld [vmem:[%s2533_s2 + $0x8] sm:$0xff]  ;;  %vm602_vm0 = vcmask 195584   ;;  %v2072_v14 = vmov 0   ;;  %v590_v15 = vld [vmem:[%s2534_s3] sm:$0xff]  ;;  %s2403_s21 = scalar_select %p478_p10, %s2154_s9, 3 }
  0x2b   : > { %1951 = vset.pattern.permute.xlu1 %v2072_v14  ;;  %1950 = vset.pattern.permute.xlu0 %v2072_v14  ;;  %v598_v16 = vld [vmem:[%s2534_s3 + $0x40] sm:$0xff]  ;;  %v505_v17 = vld [vmem:[%s2533_s2 + $0x28] sm:$0xff]  ;;  %v487_v19 = vld [vmem:[%s2205_s14 + $0x10] sm:$0xff]  ;;  %vm2074_vm1 = vmmov 0   ;;  %s1782_s15 = sshll.u32 (%p2169_p5), %s2154_s9, 3 }
  0x2c   : > { %524 = vperm.xlu0 %1950, %v502_v12   ;;  %519 = vperm.xlu1 %1951, %v501_v13   ;;  %v504_v18 = vld [vmem:[%s2533_s2 + $0x20] sm:$0xff]  ;;  %v486_v20 = vld [vmem:[%s2205_s14 + $0x8] sm:$0xff]  ;;  %v503_v22 = vld [vmem:[%s2533_s2 + $0x18] sm:$0xff]  ;;  %s480_s30 = scalar_lea.vmem %s2531_s0, %s2403_s21  ;;  %s483_s13 = scalar_lea.vmem %s2541_s10, %s2403_s21 }
  0x2d   : > { %1840 = vmatprep.mubr.msk.f32.mxu0 %vm602_vm0, %v590_v15  ;;  %1852 = vmatprep.mubr.msk.f32.mxu1 %vm602_vm0, %v598_v16  ;;  %v485_v21 = vld [vmem:[%s2205_s14] sm:$0xff]  ;;  %v591_v24 = vld [vmem:[%s2534_s3 + $0x8] sm:$0xff]  ;;  %v592_v26 = vld [vmem:[%s2534_s3 + $0x10] sm:$0xff]  ;;  %s1540_s17 = scalar_lea.vmem (%p2169_p5), %s2542_s11, %s1782_s15 }
  0x2e   : > { %1834 = vmatprep.subr.mxu0 %v487_v19  ;;  %1915 = vmatprep.subr.mxu1 %v487_v19  ;;  %v500_v23 = vld [vmem:[%s2533_s2] sm:$0xff]  ;;  %v599_v25 = vld [vmem:[%s2534_s3 + $0x48] sm:$0xff]  ;;  %v600_v27 = vld [vmem:[%s2534_s3 + $0x50] sm:$0xff] }
  0x2f   : > { %1835 = vmatpush3.msra.mxu0 %v487_v19  ;;  %1918 = vmatpush3.msra.mxu1 %v487_v19  ;;  %v781_v28 = vld [vmem:[%s2535_s4 + $0x28] sm:$0xff]  ;;  %v778_v29 = vld [vmem:[%s2535_s4 + $0x10] sm:$0xff]  ;;  %v593_v30 = vld [vmem:[%s2534_s3 + $0x18] sm:$0xff] }
  0x30   : > { %539 = vperm.xlu0 %1950, %v505_v17   ;;  %534 = vperm.xlu1 %1951, %v504_v18   ;;  %v601_v31 = vld [vmem:[%s2534_s3 + $0x58] sm:$0xff]  ;;  %v594_v32 = vld [vmem:[%s2534_s3 + $0x20] sm:$0xff]  ;;  %v777_v34 = vld [vmem:[%s2535_s4 + $0x8] sm:$0xff] }
  0x31   : > { %1836 = vmatprep.subr.mxu0 %v486_v20  ;;  %1916 = vmatprep.subr.mxu1 %v486_v20  ;;  %v780_v33 = vld [vmem:[%s2535_s4 + $0x20] sm:$0xff]  ;;  %v595_v35 = vld [vmem:[%s2534_s3 + $0x28] sm:$0xff]  ;;  %v596_v36 = vld [vmem:[%s2534_s3 + $0x30] sm:$0xff] }
  0x32   : > { %1837 = vmatpush3.msra.mxu0 %v486_v20  ;;  %1919 = vmatpush3.msra.mxu1 %v486_v20  ;;  %v779_v37 = vld [vmem:[%s2535_s4 + $0x18] sm:$0xff]  ;;  %v776_v38 = vld [vmem:[%s2535_s4] sm:$0xff]  ;;  %v510_v42 = vld [vmem:[%s2533_s2 + $0x50] sm:$0xff] }
  0x33   : > { %1838 = vmatprep.subr.mxu0 %v485_v21  ;;  %1917 = vmatprep.subr.mxu1 %v485_v21  ;;  %v597_v39 = vld [vmem:[%s2534_s3 + $0x38] sm:$0xff]  ;;  %v508_v41 = vld [vmem:[%s2533_s2 + $0x40] sm:$0xff]  ;;  %v509_v44 = vld [vmem:[%s2533_s2 + $0x48] sm:$0xff] }
  0x34   : > { %529 = vperm.xlu1 %1951, %v503_v22   ;;  %514 = vperm.xlu0 %1950, %v500_v23   ;;  %v511_v40 = vld [vmem:[%s2533_s2 + $0x58] sm:$0xff]  ;;  %v506_v45 = vld [vmem:[%s2533_s2 + $0x30] sm:$0xff]  ;;  %v784_v47 = vld [vmem:[%s2535_s4 + $0x40] sm:$0xff] }
  0x35   : > { %1839 = vmatpush3.msra.mxu0 %v485_v21  ;;  %1920 = vmatpush3.msra.mxu1 %v485_v21  ;;  %v507_v43 = vld [vmem:[%s2533_s2 + $0x38] sm:$0xff]  ;;  %v786_v48 = vld [vmem:[%s2535_s4 + $0x50] sm:$0xff]  ;;  %v785_v50 = vld [vmem:[%s2535_s4 + $0x48] sm:$0xff] }
  0x36   : > { %1841 = vmatmul.mubr.msk.f32.vlgmr.msra.gmra.mxu0 %vm602_vm0, %v591_v24  ;;  %1853 = vmatmul.mubr.msk.f32.vlgmr.msra.gmra.mxu1 %vm602_vm0, %v599_v25  ;;  %v787_v46 = vld [vmem:[%s2535_s4 + $0x58] sm:$0xff]  ;;  %v782_v51 = vld [vmem:[%s2535_s4 + $0x30] sm:$0xff]  ;;  %v1283_v52 = vld [vmem:[%s2538_s7 + $0x28] sm:$0xff] }
  0x37   : > { %1843 = vmatprep.mubr.msk.f32.mxu0 %vm602_vm0, %v592_v26  ;;  %1855 = vmatprep.mubr.msk.f32.mxu1 %vm602_vm0, %v600_v27  ;;  %v783_v49 = vld [vmem:[%s2535_s4 + $0x38] sm:$0xff]  ;;  %v1280_v53 = vld [vmem:[%s2538_s7 + $0x10] sm:$0xff]  ;;  %v1282_v54 = vld [vmem:[%s2538_s7 + $0x20] sm:$0xff] }
  0x38   : > { %815 = vperm.xlu1 %1951, %v781_v28   ;;  %800 = vperm.xlu0 %1950, %v778_v29   ;;  %v1279_v55 = vld [vmem:[%s2538_s7 + $0x8] sm:$0xff]  ;;  %v1281_v56 = vld [vmem:[%s2538_s7 + $0x18] sm:$0xff]  ;;  %v1278_v57 = vld [vmem:[%s2538_s7] sm:$0xff] }
  0x39   : > { %v1289_v58 = vld [vmem:[%s2538_s7 + $0x58] sm:$0xff]  ;;  %v1286_v59 = vld [vmem:[%s2538_s7 + $0x40] sm:$0xff]  ;;  %v1288_v60 = vld [vmem:[%s2538_s7 + $0x50] sm:$0xff] }
  0x3a   : > { %1844 = vmatmul.mubr.msk.f32.gmra.mxu0 %vm602_vm0, %v593_v30  ;;  %1856 = vmatmul.mubr.msk.f32.gmra.mxu1 %vm602_vm0, %v601_v31  ;;  %v1285_v61 = vld [vmem:[%s2538_s7 + $0x38] sm:$0xff]  ;;  %v1287_v62 = vld [vmem:[%s2538_s7 + $0x48] sm:$0xff]  ;;  %v1284_v63 = vld [vmem:[%s2538_s7 + $0x30] sm:$0xff] }
  0x3b   : > { %1846 = vmatprep.mubr.msk.f32.mxu0 %vm602_vm0, %v594_v32  ;;  %v1713_v0 = vld [vmem:[%s2205_s14 + $0x40] sm:$0xff]  ;;  %v1712_v1 = vld [vmem:[%s2205_s14 + $0x38] sm:$0xff]  ;;  %v1711_v2 = vld [vmem:[%s2205_s14 + $0x30] sm:$0xff] }
  0x3c   : > { %810 = vperm.xlu1 %1951, %v780_v33   ;;  %795 = vperm.xlu0 %1950, %v777_v34   ;;  %v944_v3 = vld [vmem:[%s2537_s6] sm:$0xff]  ;;  %v945_v4 = vld [vmem:[%s2537_s6 + $0x8] sm:$0xff]  ;;  %v946_v6 = vld [vmem:[%s2537_s6 + $0x10] sm:$0xff] }
  0x3d   : > { %1858 = vmatprep.subr.mxu1 %v1713_v0  ;;  %1864 = vmatprep.mubr.msk.f32.mxu1 %vm602_vm0, %v944_v3  ;;  %v932_v5 = vld [vmem:[%s2536_s5] sm:$0xff]  ;;  %v947_v7 = vld [vmem:[%s2537_s6 + $0x18] sm:$0xff]  ;;  %v949_v10 = vld [vmem:[%s2537_s6 + $0x28] sm:$0xff] }
  0x3e   : > { %1847 = vmatmul.mubr.msk.f32.gmra.mxu0 %vm602_vm0, %v595_v35  ;;  %1859 = vmatpush3.msra.mxu1 %v1713_v0  ;;  %v948_v9 = vld [vmem:[%s2537_s6 + $0x20] sm:$0xff]  ;;  %v950_v11 = vld [vmem:[%s2537_s6 + $0x30] sm:$0xff]  ;;  %v951_v13 = vld [vmem:[%s2537_s6 + $0x38] sm:$0xff] }
  0x3f   : > { %1849 = vmatprep.mubr.msk.f32.mxu0 %vm602_vm0, %v596_v36  ;;  %1860 = vmatprep.subr.mxu1 %v1712_v1  ;;  %v952_v15 = vld [vmem:[%s2537_s6 + $0x40] sm:$0xff]  ;;  %v953_v16 = vld [vmem:[%s2537_s6 + $0x48] sm:$0xff]  ;;  %v954_v18 = vld [vmem:[%s2537_s6 + $0x50] sm:$0xff] }
  0x40   : > { %805 = vperm.xlu1 %1951, %v779_v37   ;;  %790 = vperm.xlu0 %1950, %v776_v38   ;;  %v955_v20 = vld [vmem:[%s2537_s6 + $0x58] sm:$0xff]  ;;  %v2409_v32 = vld [vmem:[%s480_s30] ss:$0 sm:$0xff]  ;;  %s1435_s30 = sld [smem:[#allocation2]] }
  0x41   : > { %1861 = vmatpush3.msra.mxu1 %v1712_v1 }
  0x42   : > { %1850 = vmatmul.mubr.msk.f32.gmra.mxu0 %vm602_vm0, %v597_v39  ;;  %1862 = vmatprep.subr.mxu1 %v1711_v2 }
  0x43   : > { %1863 = vmatpush3.msra.mxu1 %v1711_v2  ;;  %1888 = vmatprep.mubr.msk.f32.mxu0 %vm602_vm0, %v932_v5 }
  0x44   : > { %569 = vperm.xlu1 %1951, %v511_v40   ;;  %554 = vperm.xlu0 %1950, %v508_v41  }
  0x45   : > { %1865 = vmatmul.mubr.msk.f32.vlgmr.msra.gmra.mxu1 %vm602_vm0, %v945_v4 }
  0x46   : > { %1867 = vmatprep.mubr.msk.f32.mxu1 %vm602_vm0, %v946_v6 }
  0x48   : > { %564 = vperm.xlu1 %1951, %v510_v42   ;;  %549 = vperm.xlu0 %1950, %v507_v43  }
  0x49   : > { %1868 = vmatmul.mubr.msk.f32.gmra.mxu1 %vm602_vm0, %v947_v7 }
  0x4a   : > { %1870 = vmatprep.mubr.msk.f32.mxu1 %vm602_vm0, %v948_v9 }
  0x4c   : > { %559 = vperm.xlu1 %1951, %v509_v44   ;;  %544 = vperm.xlu0 %1950, %v506_v45  }
  0x4d   : > { %1871 = vmatmul.mubr.msk.f32.gmra.mxu1 %vm602_vm0, %v949_v10 }
  0x4e   : > { %1873 = vmatprep.mubr.msk.f32.mxu1 %vm602_vm0, %v950_v11 }
  0x50   : > { %845 = vperm.xlu1 %1951, %v787_v46   ;;  %830 = vperm.xlu0 %1950, %v784_v47  }
  0x51   : > { %1874 = vmatmul.mubr.msk.f32.gmra.mxu1 %vm602_vm0, %v951_v13 }
  0x52   : > { %1876 = vmatprep.mubr.msk.f32.mxu1 %vm602_vm0, %v952_v15 }
  0x54   : > { %840 = vperm.xlu1 %1951, %v786_v48   ;;  %825 = vperm.xlu0 %1950, %v783_v49  }
  0x55   : > { %1877 = vmatmul.mubr.msk.f32.gmra.mxu1 %vm602_vm0, %v953_v16 }
  0x56   : > { %1879 = vmatprep.mubr.msk.f32.mxu1 %vm602_vm0, %v954_v18 }
  0x58   : > { %835 = vperm.xlu1 %1951, %v785_v50   ;;  %820 = vperm.xlu0 %1950, %v782_v51  }
  0x59   : > { %1880 = vmatmul.mubr.msk.f32.gmra.mxu1 %vm602_vm0, %v955_v20 }
  0x5c   : > { %1317 = vperm.xlu1 %1951, %v1283_v52   ;;  %1302 = vperm.xlu0 %1950, %v1280_v53  }
  0x60   : > { %1312 = vperm.xlu1 %1951, %v1282_v54   ;;  %1297 = vperm.xlu0 %1950, %v1279_v55  }
  0x64   : > { %1307 = vperm.xlu1 %1951, %v1281_v56   ;;  %1292 = vperm.xlu0 %1950, %v1278_v57  }
  0x68   : > { %1347 = vperm.xlu1 %1951, %v1289_v58   ;;  %1332 = vperm.xlu0 %1950, %v1286_v59  }
  0x6c   : > { %1342 = vperm.xlu1 %1951, %v1288_v60   ;;  %1327 = vperm.xlu0 %1950, %v1285_v61  }
  0x70   : > { %1337 = vperm.xlu1 %1951, %v1287_v62   ;;  %1322 = vperm.xlu0 %1950, %v1284_v63  }
  0xa7   : > { %v520_v8 = vpop.permute.xlu1 %519  ;;  %v525_v14 = vpop.permute.xlu0 %524 }
  0xa8   : > { %v579_v34 = vmul.f32 %v2409_v32, %v520_v8  ;;  %v580_v47 = vmul.f32 %v2409_v32, %v525_v14 }
  0xab   : > { %v535_v12 = vpop.permute.xlu1 %534  ;;  %v540_v19 = vpop.permute.xlu0 %539 }
  0xac   : > { %v583_v52 = vmul.f32 %v2409_v32, %v540_v19  ;;  %v582_v60 = vmul.f32 %v2409_v32, %v535_v12 }
  0xaf   : > { %v530_v17 = vpop.permute.xlu1 %529  ;;  %v515_v22 = vpop.permute.xlu0 %514 }
  0xb0   : > { %v578_v37 = vmul.f32 %v2409_v32, %v515_v22  ;;  %v581_v45 = vmul.f32 %v2409_v32, %v530_v17 }
  0xb3   : > { %v816_v21 = vpop.permute.xlu1 %815  ;;  %v801_v24 = vpop.permute.xlu0 %800 }
  0xb7   : > { %v811_v23 = vpop.permute.xlu1 %810  ;;  %v796_v26 = vpop.permute.xlu0 %795 }
  0xbb   : > { %v806_v25 = vpop.permute.xlu1 %805  ;;  %v791_v28 = vpop.permute.xlu0 %790 }
  0xbf   : > { %v570_v27 = vpop.permute.xlu1 %569  ;;  %v555_v30 = vpop.permute.xlu0 %554 }
  0xc0   : > { %v589_v0 = vmul.f32 %v2409_v32, %v570_v27  ;;  %v586_v11 = vmul.f32 %v2409_v32, %v555_v30 }
  0xc3   : > { %v565_v29 = vpop.permute.xlu1 %564  ;;  %v550_v33 = vpop.permute.xlu0 %549 }
  0xc4   : > { %v588_v1 = vmul.f32 %v2409_v32, %v565_v29 }
  0xc7   : > { %v560_v31 = vpop.permute.xlu1 %559  ;;  %v545_v42 = vpop.permute.xlu0 %544 }
  0xc8   : > { %v587_v57 = vmul.f32 %v2409_v32, %v560_v31 }
  0xcb   : > { %v846_v38 = vpop.permute.xlu1 %845  ;;  %v831_v61 = vpop.permute.xlu0 %830 }
  0xcf   : > { %v841_v53 = vpop.permute.xlu1 %840  ;;  %v826_v19 = vpop.permute.xlu0 %825 }
  0xd3   : > { %v836_v12 = vpop.permute.xlu1 %835 }
  0xf6   : > { %v1842_v35 = vpop.f32.mrf.mxu0  ;;  %v1854_v36 = vpop.f32.mrf.mxu1 }
  0xf7   : > { %v765_v39 = vadd.f32 %v1842_v35, %v579_v34  ;;  %v773_v2 = vadd.f32 %v1854_v36, %v587_v57  ;;  %v821_v34 = vpop.permute.xlu0 %820 }
  0xf8   : > { %v705_v40 = vpop.f32.mrf.mxu0  ;;  %v745_v41 = vpop.f32.mrf.mxu1 }
  0xf9   : > { %v849_v43 = vadd.f32 %v796_v26, %v765_v39  ;;  %v764_v44 = vadd.f32 %v705_v40, %v578_v37  ;;  %v857_v16 = vadd.f32 %v836_v12, %v773_v2  ;;  %v772_v17 = vadd.f32 %v745_v41, %v586_v11 }
  0xfa   : > { %v1845_v46 = vpop.f32.mrf.mxu0  ;;  %v1857_v50 = vpop.f32.mrf.mxu1  ;;  %v585_v26 = vmul.f32 %v2409_v32, %v550_v33 }
  0xfb   : > { %v848_v48 = vadd.f32 %v791_v28, %v764_v44  ;;  %v767_v49 = vadd.f32 %v1845_v46, %v581_v45  ;;  %v1731_v54 = vmul.f32 -1.442695, %v849_v43  ;;  %v775_v9 = vadd.f32 %v1857_v50, %v589_v0 }
  0xfc   : > { %v715_v51 = vpop.f32.mrf.mxu0  ;;  %v755_v4 = vpop.f32.mrf.mxu1  ;;  %v856_v27 = vadd.f32 %v831_v61, %v772_v17 }
  0xfd   : > { %v1730_v55 = vmul.f32 -1.442695, %v848_v48  ;;  %v766_v56 = vadd.f32 %v715_v51, %v580_v47  ;;  %v851_v58 = vadd.f32 %v806_v25, %v767_v49  ;;  %v774_v13 = vadd.f32 %v755_v4, %v588_v1  ;;  %v1708_v51 = vld [vmem:[%s2205_s14 + $0x18] sm:$0xff] }
  0xfe   : > { %v1848_v59 = vpop.f32.mrf.mxu0  ;;  %v859_v20 = vadd.f32 %v846_v38, %v775_v9  ;;  %v1736_v25 = vmul.f32 -1.442695, %v857_v16 }
  0xff   : > { %1952 = vpow2.f32 %v1730_v55  ;;  %v850_v62 = vadd.f32 %v801_v24, %v766_v56  ;;  %v769_v63 = vadd.f32 %v1848_v59, %v583_v52  ;;  %v1733_v3 = vmul.f32 -1.442695, %v851_v58  ;;  %v1710_v59 = vld [vmem:[%s2205_s14 + $0x28] sm:$0xff] }
 0x100   : > { %v725_v5 = vpop.f32.mrf.mxu0  ;;  %1954 = vpow2.f32 %v1731_v54  ;;  %v858_v24 = vadd.f32 %v841_v53, %v774_v13  ;;  %v1738_v29 = vmul.f32 -1.442695, %v859_v20  ;;  %v935_v20 = vld [vmem:[%s2536_s5 + $0x18] sm:$0xff] }
 0x101   : > { %v1732_v6 = vmul.f32 -1.442695, %v850_v62  ;;  %v853_v7 = vadd.f32 %v816_v21, %v769_v63  ;;  %v768_v8 = vadd.f32 %v725_v5, %v582_v60  ;;  %1956 = vpow2.f32 %v1733_v3  ;;  %v1709_v62 = vld [vmem:[%s2205_s14 + $0x20] sm:$0xff] }
 0x102   : > { %v1851_v10 = vpop.f32.mrf.mxu0  ;;  %v584_v21 = vmul.f32 %v2409_v32, %v545_v42  ;;  %v1737_v30 = vmul.f32 -1.442695, %v858_v24  ;;  %v938_v24 = vld [vmem:[%s2536_s5 + $0x30] sm:$0xff] }
 0x103   : > { %v1735_v14 = vmul.f32 -1.442695, %v853_v7  ;;  %v852_v15 = vadd.f32 %v811_v23, %v768_v8  ;;  %1958 = vpow2.f32 %v1732_v6  ;;  %v771_v23 = vadd.f32 %v1851_v10, %v585_v26  ;;  %v940_v26 = vld [vmem:[%s2536_s5 + $0x40] sm:$0xff] }
 0x104   : > { %v735_v22 = vpop.f32.mrf.mxu0 }
 0x105   : > { %v1734_v18 = vmul.f32 -1.442695, %v852_v15  ;;  %1960 = vpow2.f32 %v1735_v14  ;;  %v770_v28 = vadd.f32 %v735_v22, %v584_v21  ;;  %v855_v39 = vadd.f32 %v826_v19, %v771_v23  ;;  %v934_v19 = vld [vmem:[%s2536_s5 + $0x10] sm:$0xff]  ;;  %v936_v22 = vld [vmem:[%s2536_s5 + $0x20] sm:$0xff]  ;;  %v937_v21 = vld [vmem:[%s2536_s5 + $0x28] sm:$0xff]  ;;  %v1866_v23 = vpop.f32.mrf.mxu1 }
 0x107   : > { %1962 = vpow2.f32 %v1734_v18  ;;  %v854_v36 = vadd.f32 %v821_v34, %v770_v28  ;;  %v933_v18 = vld [vmem:[%s2536_s5 + $0x8] sm:$0xff]  ;;  %v942_v28 = vld [vmem:[%s2536_s5 + $0x50] sm:$0xff] }
 0x108   : > { %1964 = vpow2.f32 %v1736_v25  ;;  %v939_v25 = vld [vmem:[%s2536_s5 + $0x38] sm:$0xff] }
 0x109   : > { %1966 = vtanh.f32 %v856_v27  ;;  %v941_v27 = vld [vmem:[%s2536_s5 + $0x48] sm:$0xff] }
 0x10a   : > { %1968 = vpow2.f32 %v1738_v29  ;;  %v943_v29 = vld [vmem:[%s2536_s5 + $0x58] sm:$0xff] }
 0x10b   : > { %1970 = vpow2.f32 %v1737_v30  ;;  %v2073_v30 = vmov 0.0  }
 0x10c   : > { %v1953_v31 = vpop.eup %1952  ;;  %1906 = vmatprep.subr.mxu1 %v2073_v30  ;;  %1912 = vmatprep.mubr.msk.f32.mxu1 %vm2074_vm1, %v2073_v30 }
 0x10d   : > { %v869_v35 = vadd.f32 1.0, %v1953_v31  ;;  %v1955_v37 = vpop.eup %1954  ;;  %v1058_v31 = vpop.f32.mrf.mxu1 }
 0x10e   : > { %v1957_v38 = vpop.eup %1956  ;;  %v870_v32 = vadd.f32 1.0, %v1955_v37 }
 0x10f   : > { %1972 = vrcp.f32 %v869_v35  ;;  %v887_v40 = vadd.f32 1.0, %v1957_v38  ;;  %v1869_v34 = vpop.f32.mrf.mxu1  ;;  %v1318_v35 = vpop.permute.xlu1 %1317 }
 0x110   : > { %v1959_v41 = vpop.eup %1958  ;;  %1974 = vtanh.f32 %v854_v36  ;;  %v1303_v36 = vpop.permute.xlu0 %1302 }
 0x111   : > { %1976 = vrcp.f32 %v887_v40  ;;  %v871_v33 = vadd.f32 1.0, %v1959_v41  ;;  %v1068_v37 = vpop.f32.mrf.mxu1 }
 0x112   : > { %v1961_v42 = vpop.eup %1960  ;;  %1978 = vtanh.f32 %v855_v39 }
 0x113   : > { %1980 = vrcp.f32 %v871_v33  ;;  %v889_v44 = vadd.f32 1.0, %v1961_v42  ;;  %v1313_v38 = vpop.permute.xlu1 %1312  ;;  %v1872_v40 = vpop.f32.mrf.mxu1 }
 0x114   : > { %v1963_v43 = vpop.eup %1962  ;;  %1982 = vrcp.f32 %v870_v32  ;;  %v1298_v39 = vpop.permute.xlu0 %1297 }
 0x115   : > { %v888_v45 = vadd.f32 1.0, %v1963_v43  ;;  %1984 = vrcp.f32 %v889_v44  ;;  %v1965_v46 = vpop.eup %1964  ;;  %v1078_v41 = vpop.f32.mrf.mxu1 }
 0x116   : > { %v1967_v47 = vpop.eup %1966  ;;  %v908_v54 = vadd.f32 1.0, %v1965_v46 }
 0x117   : > { %1986 = vrcp.f32 %v888_v45  ;;  %v1969_v48 = vpop.eup %1968  ;;  %v1308_v32 = vpop.permute.xlu1 %1307 }
 0x118   : > { %v1971_v49 = vpop.eup %1970  ;;  %v910_v61 = vadd.f32 1.0, %v1969_v48  ;;  %1988 = vrcp.f32 %v908_v54  ;;  %v1293_v33 = vpop.permute.xlu0 %1292 }
 0x119   : > { %v909_v1 = vadd.f32 1.0, %v1971_v49  ;;  %v2481_v43 = vpop.f32.mrf.mxu1 }
 0x11b   : > { %v1088_v49 = vpop.f32.mrf.mxu1 }
 0x11c   : > { %v1973_v50 = vpop.eup %1972 }
 0x11d   : > { %v1975_v52 = vpop.eup %1974 }
 0x11e   : > { %v1977_v53 = vpop.eup %1976  ;;  %v920_v57 = vmul.f32 %v1975_v52, %v1973_v50  ;;  %v1348_v50 = vpop.permute.xlu1 %1347 }
 0x11f   : > { %v1979_v55 = vpop.eup %1978  ;;  %v917_v56 = vmul.f32 %v1977_v53, %v1708_v51  ;;  %v1333_v51 = vpop.permute.xlu0 %1332 }
 0x120   : > { %v1981_v58 = vpop.eup %1980 }
 0x121   : > { %v1983_v60 = vpop.eup %1982  ;;  %v923_v63 = vadd.f32 %v920_v57, %v917_v56  ;;  %v922_v3 = vmul.f32 %v1981_v58, %v1967_v47 }
 0x122   : > { %v1985_v0 = vpop.eup %1984  ;;  %v921_v6 = vmul.f32 %v1983_v60, %v1979_v55  ;;  %v1878_v60 = vpop.f32.mrf.mxu1 }
 0x123   : > { %v919_v4 = vmul.f32 %v1985_v0, %v1710_v59  ;;  %1773 = vst [vmem:[%s2427_s12 + $0x18] sm:$0xff] %v923_v63  ;;  %1990 = vtanh.f32 %v923_v63 }
 0x124   : > { %v1987_v2 = vpop.eup %1986  ;;  %1992 = vrcp.f32 %v910_v61 }
 0x125   : > { %v918_v5 = vmul.f32 %v1987_v2, %v1709_v62  ;;  %v925_v7 = vadd.f32 %v922_v3, %v919_v4  ;;  %1994 = vrcp.f32 %v909_v1  ;;  %v1989_v9 = vpop.eup %1988  ;;  %v1343_v1 = vpop.permute.xlu1 %1342 }
 0x126   : > { %v1328_v2 = vpop.permute.xlu0 %1327 }
 0x127   : > { %v924_v8 = vadd.f32 %v921_v6, %v918_v5  ;;  %1996 = vtanh.f32 %v925_v7  ;;  %1775 = vst [vmem:[%s2427_s12 + $0x28] sm:$0xff] %v925_v7  ;;  %v1098_v7 = vpop.f32.mrf.mxu1 }
 0x129   : > { %1774 = vst [vmem:[%s2427_s12 + $0x20] sm:$0xff] %v924_v8  ;;  %1998 = vtanh.f32 %v924_v8 }
 0x130   : > { %v1991_v10 = vpop.eup %1990 }
 0x131   : > { %v929_v11 = vmul.f32 %v1991_v10, %v1989_v9  ;;  %v1993_v12 = vpop.eup %1992 }
 0x132   : > { %v1995_v13 = vpop.eup %1994 }
 0x133   : > { %1511 = vst [vmem:[%s2427_s12] sm:$0xff] %v929_v11 }
 0x134   : > { %v1997_v14 = vpop.eup %1996 }
 0x135   : > { %v931_v16 = vmul.f32 %v1997_v14, %v1993_v12  ;;  %v1881_v14 = vpop.f32.mrf.mxu1 }
 0x136   : > { %v1999_v15 = vpop.eup %1998 }
 0x137   : > { %v930_v17 = vmul.f32 %v1999_v15, %v1995_v13  ;;  %1882 = vmatprep.subr.mxu0 %v931_v16  ;;  %1513 = vst [vmem:[%s2427_s12 + $0x10] sm:$0xff] %v931_v16  ;;  %v1323_v15 = vpop.permute.xlu0 %1322 }
 0x138   : > { %1883 = vmatpush3.msra.mxu0 %v931_v16 }
 0x139   : > { %1512 = vst [vmem:[%s2427_s12 + $0x8] sm:$0xff] %v930_v17  ;;  %1884 = vmatprep.subr.mxu0 %v930_v17 }
 0x13a   : > { %1885 = vmatpush3.msra.mxu0 %v930_v17  ;;  %v1338_v17 = vpop.permute.xlu1 %1337 }
 0x13b   : > { %1886 = vmatprep.subr.mxu0 %v929_v11 }
 0x13c   : > { %1887 = vmatpush3.msra.mxu0 %v929_v11 }
 0x13d   : > { %1889 = vmatmul.mubr.msk.f32.vlgmr.msra.gmra.mxu0 %vm602_vm0, %v933_v18 }
 0x13e   : > { %1891 = vmatprep.mubr.msk.f32.mxu0 %vm602_vm0, %v934_v19 }
 0x141   : > { %1892 = vmatmul.mubr.msk.f32.gmra.mxu0 %vm602_vm0, %v935_v20 }
 0x142   : > { %1894 = vmatprep.mubr.msk.f32.mxu0 %vm602_vm0, %v936_v22 }
 0x145   : > { %1895 = vmatmul.mubr.msk.f32.gmra.mxu0 %vm602_vm0, %v937_v21 }
 0x146   : > { %1897 = vmatprep.mubr.msk.f32.mxu0 %vm602_vm0, %v938_v24 }
 0x149   : > { %1898 = vmatmul.mubr.msk.f32.gmra.mxu0 %vm602_vm0, %v939_v25  ;;  %v1108_v25 = vpop.f32.mrf.mxu1 }
 0x14a   : > { %1900 = vmatprep.mubr.msk.f32.mxu0 %vm602_vm0, %v940_v26 }
 0x14d   : > { %1901 = vmatmul.mubr.msk.f32.gmra.mxu0 %vm602_vm0, %v941_v27 }
 0x14e   : > { %1903 = vmatprep.mubr.msk.f32.mxu0 %vm602_vm0, %v942_v28 }
 0x151   : > { %1904 = vmatmul.mubr.msk.f32.gmra.mxu0 %vm602_vm0, %v943_v29 }
 0x1fd   : > { %v1890_v42 = vpop.f32.mrf.mxu0 }
 0x1fe   : > { %v1225_v44 = vadd.f32 %v1890_v42, %v1866_v23 }
 0x1ff   : > { %v1219_v45 = vpop.f32.mrf.mxu0 }
 0x200   : > { %v1351_v46 = vadd.f32 %v1298_v39, %v1225_v44  ;;  %v1220_v47 = vadd.f32 %v1219_v45, %v1058_v31 }
 0x201   : > { %v1893_v48 = vpop.f32.mrf.mxu0 }
 0x202   : > { %v1764_v52 = vmul.f32 -1.442695, %v1351_v46  ;;  %v1350_v53 = vadd.f32 %v1293_v33, %v1220_v47  ;;  %v1235_v54 = vadd.f32 %v1893_v48, %v1869_v34 }
 0x203   : > { %v1229_v55 = vpop.f32.mrf.mxu0 }
 0x204   : > { %2000 = vpow2.f32 %v1764_v52  ;;  %v1763_v56 = vmul.f32 -1.442695, %v1350_v53  ;;  %v1353_v57 = vadd.f32 %v1308_v32, %v1235_v54  ;;  %v1230_v58 = vadd.f32 %v1229_v55, %v1068_v37  ;;  %v1714_v52 = vld [vmem:[%s2205_s14 + $0x48] sm:$0xff] }
 0x205   : > { %v1896_v59 = vpop.f32.mrf.mxu0 }
 0x206   : > { %2002 = vpow2.f32 %v1763_v56  ;;  %v1766_v61 = vmul.f32 -1.442695, %v1353_v57  ;;  %v1352_v62 = vadd.f32 %v1303_v36, %v1230_v58  ;;  %v1245_v63 = vadd.f32 %v1896_v59, %v1872_v40 }
 0x207   : > { %v1239_v0 = vpop.f32.mrf.mxu0 }
 0x208   : > { %2004 = vpow2.f32 %v1766_v61  ;;  %v1765_v3 = vmul.f32 -1.442695, %v1352_v62  ;;  %v1355_v4 = vadd.f32 %v1318_v35, %v1245_v63  ;;  %v1240_v5 = vadd.f32 %v1239_v0, %v1078_v41  ;;  %v1715_v0 = vld [vmem:[%s2205_s14 + $0x50] sm:$0xff] }
 0x209   : > { %v1899_v6 = vpop.f32.mrf.mxu0 }
 0x20a   : > { %2006 = vpow2.f32 %v1765_v3  ;;  %v1768_v8 = vmul.f32 -1.442695, %v1355_v4  ;;  %v1354_v9 = vadd.f32 %v1313_v38, %v1240_v5  ;;  %v1255_v38 = vadd.f32 %v1899_v6, %v2481_v43 }
 0x20b   : > { %v1249_v10 = vpop.f32.mrf.mxu0 }
 0x20c   : > { %2008 = vpow2.f32 %v1768_v8  ;;  %v1767_v11 = vmul.f32 -1.442695, %v1354_v9  ;;  %v1250_v12 = vadd.f32 %v1249_v10, %v1088_v49  ;;  %v1357_v45 = vadd.f32 %v1328_v2, %v1255_v38 }
 0x20d   : > { %v1902_v13 = vpop.f32.mrf.mxu0 }
 0x20e   : > { %2010 = vpow2.f32 %v1767_v11  ;;  %v1265_v16 = vadd.f32 %v1902_v13, %v1878_v60  ;;  %v1356_v18 = vadd.f32 %v1323_v15, %v1250_v12  ;;  %v1716_v60 = vld [vmem:[%s2205_s14 + $0x58] sm:$0xff] }
 0x20f   : > { %v1259_v19 = vpop.f32.mrf.mxu0 }
 0x210   : > { %v1359_v20 = vadd.f32 %v1338_v17, %v1265_v16  ;;  %v1260_v22 = vadd.f32 %v1259_v19, %v1098_v7  ;;  %2012 = vtanh.f32 %v1356_v18 }
 0x211   : > { %v2001_v21 = vpop.eup %2000  ;;  %v1905_v24 = vpop.f32.mrf.mxu0 }
 0x212   : > { %v1372_v26 = vadd.f32 1.0, %v2001_v21  ;;  %v1769_v27 = vmul.f32 -1.442695, %v1359_v20  ;;  %v1275_v28 = vadd.f32 %v1905_v24, %v1881_v14  ;;  %v1358_v23 = vadd.f32 %v1333_v51, %v1260_v22  ;;  %v1434_v20 = vld [vmem:[%s2539_s8] sm:$0x1] }
 0x213   : > { %v2003_v29 = vpop.eup %2002  ;;  %v1269_v31 = vpop.f32.mrf.mxu0  ;;  %v1436_v22 = vstv %s1435_s30 }
 0x214   : > { %2014 = vrcp.f32 %v1372_v26  ;;  %v1371_v34 = vadd.f32 1.0, %v2003_v29  ;;  %v1361_v35 = vadd.f32 %v1348_v50, %v1275_v28  ;;  %v1270_v36 = vadd.f32 %v1269_v31, %v1108_v25  ;;  %v1593_v26 = vld [vmem:[%s2427_s12 + $0x8] sm:$0xff] (%p2169_p5)  ;;  %v1597_v28 = vld [vmem:[%s2427_s12 + $0x18] sm:$0xff] (%p2169_p5)  ;;  %v1599_v29 = vld [vmem:[%s2427_s12 + $0x20] sm:$0xff] (%p2169_p5) }
 0x215   : > { %v2005_v37 = vpop.eup %2004  ;;  %2016 = vpow2.f32 %v1769_v27  ;;  %v1595_v27 = vld [vmem:[%s2427_s12 + $0x10] sm:$0xff] (%p2169_p5)  ;;  %1594 = vst [vmem:[%s1540_s17 + $0x20] sm:$0xff] (%p2169_p5), %v1593_v26  ;;  %1598 = vst [vmem:[%s1540_s17 + $0x60] sm:$0xff] (%p2169_p5), %v1597_v28 }
 0x216   : > { %2018 = vrcp.f32 %v1371_v34  ;;  %v1389_v39 = vadd.f32 1.0, %v2005_v37  ;;  %v1771_v40 = vmul.f32 -1.442695, %v1361_v35  ;;  %v1360_v41 = vadd.f32 %v1343_v1, %v1270_v36  ;;  %1596 = vst [vmem:[%s1540_s17 + $0x40] sm:$0xff] (%p2169_p5), %v1595_v27  ;;  %1600 = vst [vmem:[%s1540_s17 + $0x80] sm:$0xff] (%p2169_p5), %v1599_v29 }
 0x217   : > { %v2007_v32 = vpop.eup %2006  ;;  %2020 = vtanh.f32 %v1358_v23  ;;  %v1601_v23 = vld [vmem:[%s2427_s12 + $0x28] sm:$0xff] (%p2169_p5) }
 0x218   : > { %2022 = vrcp.f32 %v1389_v39  ;;  %v1373_v33 = vadd.f32 1.0, %v2007_v32  ;;  %v1770_v42 = vmul.f32 -1.442695, %v1360_v41  ;;  %1602 = vst [vmem:[%s1540_s17 + $0xa0] sm:$0xff] (%p2169_p5), %v1601_v23 }
 0x219   : > { %v2009_v44 = vpop.eup %2008  ;;  %2024 = vpow2.f32 %v1771_v40 }
 0x21a   : > { %2026 = vrcp.f32 %v1373_v33  ;;  %v1391_v46 = vadd.f32 1.0, %v2009_v44 }
 0x21b   : > { %v2011_v47 = vpop.eup %2010  ;;  %2028 = vpow2.f32 %v1770_v42 }
 0x21c   : > { %2030 = vrcp.f32 %v1391_v46  ;;  %v1390_v43 = vadd.f32 1.0, %v2011_v47 }
 0x21d   : > { %2032 = vtanh.f32 %v1357_v45  ;;  %v2013_v48 = vpop.eup %2012 }
 0x21e   : > { %2034 = vrcp.f32 %v1390_v43 }
 0x221   : > { %v2015_v49 = vpop.eup %2014 }
 0x222   : > { %v2017_v50 = vpop.eup %2016 }
 0x223   : > { %v2019_v51 = vpop.eup %2018  ;;  %v1410_v55 = vadd.f32 1.0, %v2017_v50 }
 0x224   : > { %v2021_v53 = vpop.eup %2020  ;;  %v1422_v58 = vmul.f32 %v2019_v51, %v2013_v48 }
 0x225   : > { %v2023_v54 = vpop.eup %2022  ;;  %2036 = vrcp.f32 %v1410_v55 }
 0x226   : > { %v2025_v56 = vpop.eup %2024  ;;  %v1419_v57 = vmul.f32 %v2023_v54, %v1714_v52 }
 0x227   : > { %v2027_v59 = vpop.eup %2026  ;;  %v1412_v1 = vadd.f32 1.0, %v2025_v56 }
 0x228   : > { %v2029_v61 = vpop.eup %2028  ;;  %v1425_v62 = vadd.f32 %v1422_v58, %v1419_v57  ;;  %v1424_v4 = vmul.f32 %v2027_v59, %v2021_v53 }
 0x229   : > { %v2031_v63 = vpop.eup %2030  ;;  %v1411_v6 = vadd.f32 1.0, %v2029_v61 }
 0x22a   : > { %v2033_v2 = vpop.eup %2032  ;;  %2038 = vtanh.f32 %v1425_v62  ;;  %1779 = vst [vmem:[%s2427_s12 + $0x48] sm:$0xff] %v1425_v62  ;;  %v1421_v3 = vmul.f32 %v2031_v63, %v1716_v60 }
 0x22b   : > { %v2035_v5 = vpop.eup %2034  ;;  %v1423_v8 = vmul.f32 %v2033_v2, %v2015_v49  ;;  %2040 = vrcp.f32 %v1412_v1 }
 0x22c   : > { %v1420_v7 = vmul.f32 %v2035_v5, %v1715_v0  ;;  %v1427_v9 = vadd.f32 %v1424_v4, %v1421_v3 }
 0x22e   : > { %v1426_v10 = vadd.f32 %v1423_v8, %v1420_v7  ;;  %2042 = vtanh.f32 %v1427_v9  ;;  %1781 = vst [vmem:[%s2427_s12 + $0x58] sm:$0xff] %v1427_v9 }
 0x22f   : > { %2044 = vrcp.f32 %v1411_v6 }
 0x230   : > { %2046 = vtanh.f32 %v1426_v10  ;;  %1780 = vst [vmem:[%s2427_s12 + $0x50] sm:$0xff] %v1426_v10 }
 0x231   : > { %v1609_v36 = vld [vmem:[%s2427_s12 + $0x48] sm:$0xff] (%p2169_p5) }
 0x232   : > { %v2037_v11 = vpop.eup %2036  ;;  %1610 = vst [vmem:[%s1540_s17 + $0x120] sm:$0xff] (%p2169_p5), %v1609_v36 }
 0x235   : > { %v1613_v38 = vld [vmem:[%s2427_s12 + $0x58] sm:$0xff] (%p2169_p5) }
 0x236   : > { %1614 = vst [vmem:[%s1540_s17 + $0x160] sm:$0xff] (%p2169_p5), %v1613_v38 }
 0x237   : > { %v2039_v12 = vpop.eup %2038  ;;  %v1611_v37 = vld [vmem:[%s2427_s12 + $0x50] sm:$0xff] (%p2169_p5) }
 0x238   : > { %v1431_v13 = vmul.f32 %v2039_v12, %v2037_v11  ;;  %v2041_v14 = vpop.eup %2040  ;;  %1612 = vst [vmem:[%s1540_s17 + $0x140] sm:$0xff] (%p2169_p5), %v1611_v37 }
 0x23a   : > { %1776 = vst [vmem:[%s2427_s12 + $0x30] sm:$0xff] %v1431_v13 }
 0x23b   : > { %v2043_v15 = vpop.eup %2042 }
 0x23c   : > { %v2045_v16 = vpop.eup %2044  ;;  %v1433_v17 = vmul.f32 %v2043_v15, %v2041_v14 }
 0x23d   : > { %v2047_v18 = vpop.eup %2046 }
 0x23e   : > { %1907 = vmatpush3.msra.mxu1 %v1433_v17  ;;  %1778 = vst [vmem:[%s2427_s12 + $0x40] sm:$0xff] %v1433_v17  ;;  %v1432_v19 = vmul.f32 %v2047_v18, %v2045_v16 }
 0x23f   : > { %1908 = vmatprep.subr.mxu1 %v2073_v30 }
 0x240   : > { %1909 = vmatpush3.msra.mxu1 %v1432_v19  ;;  %1777 = vst [vmem:[%s2427_s12 + $0x38] sm:$0xff] %v1432_v19 }
 0x241   : > { %1910 = vmatprep.subr.mxu1 %v2073_v30  ;;  %v1591_v30 = vld [vmem:[%s2427_s12] sm:$0xff] (%p2169_p5)  ;;  %v1603_v31 = vld [vmem:[%s2427_s12 + $0x30] sm:$0xff] (%p2169_p5) }
 0x242   : > { %1911 = vmatpush3.msra.mxu1 %v1431_v13  ;;  %1592 = vst [vmem:[%s1540_s17] sm:$0xff] (%p2169_p5), %v1591_v30  ;;  %1604 = vst [vmem:[%s1540_s17 + $0xc0] sm:$0xff] (%p2169_p5), %v1603_v31 }
 0x243   : > { %1913 = vmatmul.mubr.msk.f32.vlgmr.msra.gmra.mxu1 %vm602_vm0, %v1434_v20 }
 0x245   : > { %v1607_v35 = vld [vmem:[%s2427_s12 + $0x40] sm:$0xff] (%p2169_p5) }
 0x246   : > { %1608 = vst [vmem:[%s1540_s17 + $0x100] sm:$0xff] (%p2169_p5), %v1607_v35 }
 0x247   : > { %v1605_v34 = vld [vmem:[%s2427_s12 + $0x38] sm:$0xff] (%p2169_p5) }
 0x248   : > { %1606 = vst [vmem:[%s1540_s17 + $0xe0] sm:$0xff] (%p2169_p5), %v1605_v34 }
 0x302   : > { %1538 = sbr.rel (!%p2169_p5) target bundleno = 775 (0x307), region = 106 }
 0x303   : > { %v1506_v21 = vpop.f32.mrf.mxu1 }
 0x304   : > { %v1507_v24 = vadd.f32 %v1506_v21, %v1436_v22 }
 0x305   : > { %v1914_v25 = vpop.f32.mrf.mxu1 }
 0x306   : > { %1510 = vst [vmem:[%s483_s13] sm:$0x1] %v1507_v24 }
 0x307 PF: > { %p20_p11 = scmp.ge.s32.totalorder %s2157_s22, 6   ;;  %s2544_s19 = smov %s2066_s20 }
 0x308   : > { %s2545_s20 = smov %s2167_s25  ;;  %s2546_s21 = smov %s2157_s22 }
 0x309   :  { %22 = sbr.rel (!%p20_p11) target bundleno = 4 (0x4), region = 192 }

</bundles_post_ra>
